<compile_context>
chip_gen: v7x
topology: tpu7x:2x2x1
jax: 0.10.0
libtpu: 0.0.40
codegen_flags: <defaults>
</compile_context>

<pallas_src>
import jax
import jax.numpy as jnp
from jax.experimental import pallas as pl
from jax.experimental.pallas import tpu as pltpu


def _round_up(x, m):
    return ((x + m - 1) // m) * m


def _mlp_kernel(x_ref, w1_ref, b1_ref, w2_ref, b2_ref, o_ref):
    # In-kernel activation cast (f32 -> compute dtype) — VPU work, saves an HBM pre-pass.
    x = x_ref[...].astype(w1_ref.dtype)
    # Hidden layer: (TB, D) @ (D, H) on the MXU with f32 accumulation.
    h = jnp.dot(x, w1_ref[...], preferred_element_type=jnp.float32)
    # Bias + ReLU kept in f32 (v5e VPU has no bf16 ALU).
    h = jnp.maximum(h + b1_ref[...], 0.0)
    # Output layer: (TB, H) @ (H, Tp); Tp is lane-dense (multiple of 128) -> unmasked vst.
    out = jnp.dot(h.astype(w2_ref.dtype), w2_ref[...],
                  preferred_element_type=jnp.float32)
    o_ref[...] = (out + b2_ref[...]).astype(o_ref.dtype)


def prepare_net_params(w1, b1, w2, b2, compute_dtype=jnp.bfloat16):
    """One-time lane padding (to multiples of 128) and bf16 cast of the head weights.

    Hoisted out of the per-call forward so the pad/cast passes over the weights are
    paid once at model setup, not on every inference call.
    """
    D, H = w1.shape
    T = w2.shape[1]
    Dp, Hp, Tp = _round_up(D, 128), _round_up(H, 128), _round_up(T, 128)
    w1p = jnp.zeros((Dp, Hp), compute_dtype).at[:D, :H].set(w1.astype(compute_dtype))
    w2p = jnp.zeros((Hp, Tp), compute_dtype).at[:H, :T].set(w2.astype(compute_dtype))
    b1p = jnp.zeros((1, Hp), jnp.float32).at[0, :H].set(b1.astype(jnp.float32))
    b2p = jnp.zeros((1, Tp), jnp.float32).at[0, :T].set(b2.astype(jnp.float32))
    return {"w1": w1p, "b1": b1p, "w2": w2p, "b2": b2p,
            "in_dim": D, "n_tasks": T, "compute_dtype": compute_dtype}


def net_forward(features, params, *, block_b=2048, min_pallas_batch=64,
                out_dtype=None):
    """Fused MLP predictor forward: relu(x @ w1 + b1) @ w2 + b2."""
    w1p, b1p, w2p, b2p = params["w1"], params["b1"], params["w2"], params["b2"]
    D, T = params["in_dim"], params["n_tasks"]
    cd = params["compute_dtype"]
    Dp, Hp = w1p.shape
    Tp = w2p.shape[1]
    B = features.shape[0]
    assert features.shape[1] == D
    if out_dtype is None:
        # bf16 output halves the (lane-padded) output HBM stream; callers needing f32
        # can request it explicitly.
        out_dtype = cd

    # Tiny batches: a single-step pallas_call is dominated by launch/padding overhead;
    # let XLA's fused GEMM+bias+ReLU handle it (identical numerics).
    if B < min_pallas_batch:
        xd = features.astype(cd)
        h = jnp.maximum(jnp.dot(xd, w1p, preferred_element_type=jnp.float32) + b1p, 0.0)
        o = jnp.dot(h.astype(cd), w2p, preferred_element_type=jnp.float32) + b2p
        return o[:, :T].astype(out_dtype)

    # Activations: feed straight through when the feature dim is already lane-dense;
    # only pad lanes when strictly required (D not a multiple of 128).
    if D == Dp:
        x = features
    else:
        x = jnp.zeros((B, Dp), features.dtype).at[:, :D].set(features)

    # Batch tiling: choose ~block_b-row tiles without padding a near-full ghost tile.
    # The (possibly partial) edge block is handled by Pallas' masked edge load/store.
    steps = max(1, pl.cdiv(B, block_b))
    if steps == 1 and B >= 1024:
        steps = 2  # v7x: >=2 "parallel" grid steps so both TensorCores get work
    TB = _round_up(pl.cdiv(B, steps), 8)
    grid = pl.cdiv(B, TB)

    flops = 2 * B * Dp * Hp + 2 * B * Hp * Tp
    bytes_accessed = (
        x.size * x.dtype.itemsize
        + (w1p.size + w2p.size) * w1p.dtype.itemsize
        + (b1p.size + b2p.size) * 4
        + B * Tp * jnp.dtype(out_dtype).itemsize
    )

    out = pl.pallas_call(
        _mlp_kernel,
        out_shape=jax.ShapeDtypeStruct((B, Tp), out_dtype),
        grid_spec=pltpu.PrefetchScalarGridSpec(
            num_scalar_prefetch=0,
            grid=(grid,),
            in_specs=[
                pl.BlockSpec((TB, Dp), lambda i: (i, 0)),   # activations, tiled over B
                pl.BlockSpec((Dp, Hp), lambda i: (0, 0)),   # w1 (constant index -> resident)
                pl.BlockSpec((1, Hp), lambda i: (0, 0)),    # b1
                pl.BlockSpec((Hp, Tp), lambda i: (0, 0)),   # w2 (resident)
                pl.BlockSpec((1, Tp), lambda i: (0, 0)),    # b2
            ],
            out_specs=pl.BlockSpec((TB, Tp), lambda i: (i, 0)),
        ),
        compiler_params=pltpu.CompilerParams(
            dimension_semantics=("parallel",),
            # Portable scoped-VMEM cap (safe on v7x's 64 MiB physical); raise toward
            # ~100 MiB on v5e/v6e if hidden dims / TB grow.
            vmem_limit_bytes=32 * 1024 * 1024,
        ),
        cost_estimate=pl.CostEstimate(
            flops=flops, transcendentals=0, bytes_accessed=bytes_accessed),
    )(x, w1p, b1p, w2p, b2p)

    # Only the cheap task-column slice remains (12 cols); under jit it fuses into the
    # consumer.
    return out[:, :T]


def reference_forward(features, w1, b1, w2, b2, compute_dtype=jnp.bfloat16):
    # Pure-JAX reference with the same bf16-input / f32-accumulation numerics.
    xd = features.astype(compute_dtype)
    h = jnp.dot(xd, w1.astype(compute_dtype), preferred_element_type=jnp.float32)
    h = jnp.maximum(h + b1.astype(jnp.float32), 0.0)
    out = jnp.dot(h.astype(compute_dtype), w2.astype(compute_dtype),
                  preferred_element_type=jnp.float32)
    return out + b2.astype(jnp.float32)


if __name__ == "__main__":
    # Tox21-consistent head shapes: 128 graph-readout features, hidden=128, 12 tasks.
    D, H, T = 128, 128, 12

    key = jax.random.PRNGKey(0)
    k_x, k_x2, k_w1, k_b1, k_w2, k_b2 = jax.random.split(key, 6)

    w1 = jax.random.normal(k_w1, (D, H), dtype=jnp.float32) * 0.05
    b1 = jax.random.normal(k_b1, (H,), dtype=jnp.float32) * 0.05
    w2 = jax.random.normal(k_w2, (H, T), dtype=jnp.float32) * 0.05
    b2 = jax.random.normal(k_b2, (T,), dtype=jnp.float32) * 0.05

    params = prepare_net_params(w1, b1, w2, b2)   # one-time weight pad/cast

    # 1) Pallas path, multi-step pipelined grid (B=256, block_b=64 -> 4 full tiles).
    B = 256
    x = jax.random.normal(k_x, (B, D), dtype=jnp.float32)
    out = jax.block_until_ready(net_forward(x, params, block_b=64))
    ref = reference_forward(x, w1, b1, w2, b2)
    assert out.shape == (B, T)
    assert jnp.allclose(out.astype(jnp.float32), ref, atol=2e-2, rtol=2e-2), \
        "pallas (divisible grid) mismatch vs reference"

    # 2) Pallas path, non-divisible batch -> masked edge block (B=200, TB=56, grid=4).
    B2 = 200
    x2 = jax.random.normal(k_x2, (B2, D), dtype=jnp.float32)
    out2 = jax.block_until_ready(net_forward(x2, params, block_b=64))
    ref2 = reference_forward(x2, w1, b1, w2, b2)
    assert out2.shape == (B2, T)
    assert jnp.allclose(out2.astype(jnp.float32), ref2, atol=2e-2, rtol=2e-2), \
        "pallas (masked edge block) mismatch vs reference"

    # 3) Tiny batch -> XLA fallback path (same numerics).
    x3 = x[:8]
    out3 = jax.block_until_ready(net_forward(x3, params))
    ref3 = reference_forward(x3, w1, b1, w2, b2)
    assert out3.shape == (8, T)
    assert jnp.allclose(out3.astype(jnp.float32), ref3, atol=2e-2, rtol=2e-2), \
        "xla fallback mismatch vs reference"

    print("KERNEL_OK")
</pallas_src>

<mosaic_0001>
module attributes {stable_mosaic.version = 11 : i64} {
  func.func @_mlp_kernel(%arg0: i32, %arg1: memref<64x128xf32, #tpu.memory_space<vmem>>, %arg2: memref<128x128xbf16, #tpu.memory_space<vmem>>, %arg3: memref<1x128xf32, #tpu.memory_space<vmem>>, %arg4: memref<128x128xbf16, #tpu.memory_space<vmem>>, %arg5: memref<1x128xf32, #tpu.memory_space<vmem>>, %arg6: memref<64x128xbf16, #tpu.memory_space<vmem>>) attributes {dimension_semantics = [#tpu.dimension_semantics<parallel>], iteration_bounds = array<i64: 4>, scalar_prefetch = 0 : i64, scratch_operands = 0 : i64, tpu.core_type = #tpu.core_type<tc>, window_params = [{transform_indices = @transform_0, window_bounds = array<i64: 64, 128>}, {pipeline_mode = #tpu.pipeline_mode<synchronous>, transform_indices = @transform_1, window_bounds = array<i64: 128, 128>}, {pipeline_mode = #tpu.pipeline_mode<synchronous>, transform_indices = @transform_2, window_bounds = array<i64: 1, 128>}, {pipeline_mode = #tpu.pipeline_mode<synchronous>, transform_indices = @transform_3, window_bounds = array<i64: 128, 128>}, {pipeline_mode = #tpu.pipeline_mode<synchronous>, transform_indices = @transform_4, window_bounds = array<i64: 1, 128>}, {transform_indices = @transform_5, window_bounds = array<i64: 64, 128>}]} {
    %c0 = arith.constant 0 : index
    %c0_0 = arith.constant 0 : index
    %0 = vector.load %arg1[%c0, %c0_0] : memref<64x128xf32, #tpu.memory_space<vmem>>, vector<64x128xf32>
    %1 = arith.truncf %0 : vector<64x128xf32> to vector<64x128xbf16>
    %c0_1 = arith.constant 0 : index
    %c0_2 = arith.constant 0 : index
    %2 = vector.load %arg2[%c0_1, %c0_2] : memref<128x128xbf16, #tpu.memory_space<vmem>>, vector<128x128xbf16>
    %cst = arith.constant dense<0.000000e+00> : vector<64x128xf32>
    %3 = tpu.matmul %1, %2, %cst {dimension_numbers = #tpu.dot_dimension_numbers<[1], [0], [0], [1], [0, 0, 1, 1], [], []>} : vector<64x128xbf16>, vector<128x128xbf16>, vector<64x128xf32> -> vector<64x128xf32>
    %c0_3 = arith.constant 0 : index
    %c0_4 = arith.constant 0 : index
    %4 = vector.load %arg3[%c0_3, %c0_4] : memref<1x128xf32, #tpu.memory_space<vmem>>, vector<1x128xf32>
    %5 = vector.broadcast %4 : vector<1x128xf32> to vector<64x128xf32>
    %6 = arith.addf %3, %5 : vector<64x128xf32>
    %cst_5 = arith.constant 0.000000e+00 : f32
    %7 = vector.broadcast %cst_5 : f32 to vector<64x128xf32>
    %8 = arith.maximumf %6, %7 : vector<64x128xf32>
    %9 = arith.truncf %8 : vector<64x128xf32> to vector<64x128xbf16>
    %c0_6 = arith.constant 0 : index
    %c0_7 = arith.constant 0 : index
    %10 = vector.load %arg4[%c0_6, %c0_7] : memref<128x128xbf16, #tpu.memory_space<vmem>>, vector<128x128xbf16>
    %cst_8 = arith.constant dense<0.000000e+00> : vector<64x128xf32>
    %11 = tpu.matmul %9, %10, %cst_8 {dimension_numbers = #tpu.dot_dimension_numbers<[1], [0], [0], [1], [0, 0, 1, 1], [], []>} : vector<64x128xbf16>, vector<128x128xbf16>, vector<64x128xf32> -> vector<64x128xf32>
    %c0_9 = arith.constant 0 : index
    %c0_10 = arith.constant 0 : index
    %12 = vector.load %arg5[%c0_9, %c0_10] : memref<1x128xf32, #tpu.memory_space<vmem>>, vector<1x128xf32>
    %13 = vector.broadcast %12 : vector<1x128xf32> to vector<64x128xf32>
    %14 = arith.addf %11, %13 : vector<64x128xf32>
    %15 = arith.truncf %14 : vector<64x128xf32> to vector<64x128xbf16>
    %c0_11 = arith.constant 0 : index
    %c0_12 = arith.constant 0 : index
    %16 = vector.load %arg6[%c0_11, %c0_12] : memref<64x128xbf16, #tpu.memory_space<vmem>>, vector<64x128xbf16>
    tpu.vector_store %arg6[%c0_11, %c0_12], %15 {strides = array<i32>} : memref<64x128xbf16, #tpu.memory_space<vmem>>, vector<64x128xbf16>,
    return
  }
  func.func @transform_0(%arg0: i32) -> (i32, i32) {
    %c0_i32 = arith.constant 0 : i32
    %c0_i32_0 = arith.constant 0 : i32
    return %arg0, %c0_i32 : i32, i32
  }
  func.func @transform_1(%arg0: i32) -> (i32, i32) {
    %c0_i32 = arith.constant 0 : i32
    %c0_i32_0 = arith.constant 0 : i32
    %c0_i32_1 = arith.constant 0 : i32
    return %c0_i32, %c0_i32_0 : i32, i32
  }
  func.func @transform_2(%arg0: i32) -> (i32, i32) {
    %c0_i32 = arith.constant 0 : i32
    %c0_i32_0 = arith.constant 0 : i32
    %c0_i32_1 = arith.constant 0 : i32
    return %c0_i32, %c0_i32_0 : i32, i32
  }
  func.func @transform_3(%arg0: i32) -> (i32, i32) {
    %c0_i32 = arith.constant 0 : i32
    %c0_i32_0 = arith.constant 0 : i32
    %c0_i32_1 = arith.constant 0 : i32
    return %c0_i32, %c0_i32_0 : i32, i32
  }
  func.func @transform_4(%arg0: i32) -> (i32, i32) {
    %c0_i32 = arith.constant 0 : i32
    %c0_i32_0 = arith.constant 0 : i32
    %c0_i32_1 = arith.constant 0 : i32
    return %c0_i32, %c0_i32_0 : i32, i32
  }
  func.func @transform_5(%arg0: i32) -> (i32, i32) {
    %c0_i32 = arith.constant 0 : i32
    %c0_i32_0 = arith.constant 0 : i32
    return %arg0, %c0_i32 : i32, i32
  }
}

</mosaic_0001>

<bundles_post_ra>
// kernel: tpu_custom_call.1
= control target key start
LH: loop header
LB: loop body
LE: loop exit
PB: predicated region body
PF: predicated region fallthrough
CT: control target
= control target key end

     0   :  { %10 = vsyncpa [#allocation3], 0  ;;  %s1395_s0 = inlined_call_operand.hbm [shape: f32[256,128], index: 0, kind: input, shape index: {}]   ;;  %s1396_s1 = inlined_call_operand.hbm [shape: bf16[128,128], index: 1, kind: input, shape index: {}]   ;;  %s1397_s2 = inlined_call_operand.vmem [shape: f32[1,128], index: 2, kind: input, shape index: {}]   ;;  %s1398_s3 = inlined_call_operand.hbm [shape: bf16[128,128], index: 3, kind: input, shape index: {}]   ;;  %s1399_s4 = inlined_call_operand.vmem [shape: f32[1,128], index: 4, kind: input, shape index: {}]   ;;  %s1400_s5 = inlined_call_operand.hbm [shape: bf16[256,128], index: 5, kind: output, shape index: {}]  }
   0x1   :  { %12 = vsyncpa [#allocation3 + $0x1], 0 }
   0x2   :  { %13 = vsyncpa [#allocation6], 0 }
   0x3   :  { %14 = vsyncpa [#allocation4], 0 }
   0x4   :  { %16 = vsyncpa [#allocation4 + $0x1], 0  ;;  %s1153_s18 = smov 0   ;;  %s1155_s19 = smov 0  }
   0x5   :  { %s1157_s20 = smov 0   ;;  %s1159_s21 = smov 0  }
   0x6 LB: > { %s1174_s22 = sadd.s32 4294967295, %s1111_s21   ;;  %s717_s23 = sadd.s32 4294967294, %s1111_s21   ;;  %s1111_s21 = sphi %s1159_s21, %s1419_s21   ;;  %s1107_s20 = sphi %s1157_s20, %s1418_s20   ;;  %s1103_s19 = sphi %s1155_s19, %s1417_s19   ;;  %s1099_s18 = sphi %s1153_s18, %s1416_s18  }
   0x7   : > { %p42_p0 = scmp.ne.s32.totalorder %s1103_s19, %s1099_s18  ;;  %p1401_p1 = scmp.eq.s32.totalorder %s1174_s22, 0 }
   0x8   : > { %p156_p3 = scmp.eq.s32.totalorder %s717_s23, 3  ;;  %p718_p5 = scmp.ge.s32.totalorder %s1111_s21, 1 }
   0x9   : > { %p1183_p4 = por %p1401_p1, %p42_p0  ;;  %p163_p7 = scmp.lt.s32.totalorder %s1111_s21, 5 }
   0xa   : > { %p1188_p6 = por %p156_p3, %p42_p0  ;;  %s1113_s27 = smov [#allocation5]  }
   0xb   : > { %s1404_s24 = scalar_select %p1183_p4, 1, 0 }
   0xc   : > { %s1405_s25 = scalar_select %p1188_p6, 1, 0 }
   0xd   : > { %p1193_p8 = pnand %p718_p5, %p163_p7  ;;  %s175_s28 = sshll.u32 %s1113_s27, 4  ;;  %s176_s28 = int_to_ptr.vmem [resolvable:$true] %s175_s28 }
   0xe   : > { %s1114_s30 = smov [#allocation7]   ;;  %s955_s9 = scalar_lea.hbm %s1396_s1, 1024 }
   0xf   : > { %s1406_s26 = scalar_select %p1193_p8, 1, 0 }
  0x10   : > { %p878_p9 = pneg %p1193_p8  ;;  %s191_s6 = sshll.u32 %s1114_s30, 4  ;;  %s1205_s6 = int_to_ptr.vmem [resolvable:$true] %s191_s6 }
  0x11   : > { %p956_p11 = scmp.ne.s32.totalorder %s1396_s1, %s955_s9  ;;  %p962_p3 = scmp.lt.u32.totalorder %s955_s9, %s1396_s1 }
  0x12   : > { %p1201_p10 = pnand %p878_p9, %p1401_p1 }
  0x14   : > { %p957_p12 = pneg %p1201_p10 }
  0x16   : > { %p958_p13 = pnand %p957_p12, %p956_p11 }
  0x18   : > { %p959_p0 = pneg %p958_p13 }
  0x1a   : > { %p964_p5 = pnand %p962_p3, %p959_p0 }
  0x1c   : > { %967 = shalt.err (!%p964_p5)
}
  0x1d   : > { %s968_s14 = scalar_lea.vmem %s176_s28, 1024  ;;  %p976_p2 = scmp.lt.s32.totalorder %s176_s28, %s176_s28 }
  0x1e   : > { %p969_p7 = scmp.ne.s32.totalorder %s176_s28, %s968_s14  ;;  %p977_p6 = scmp.lt.s32.totalorder %s968_s14, %s968_s14 }
  0x20   : > { %p971_p9 = pnand %p969_p7, %p957_p12  ;;  %p978_p4 = por %p977_p6, %p976_p2 }
  0x22   : > { %p972_p1 = pneg %p971_p9 }
  0x24   : > { %p979_p8 = pnand %p978_p4, %p972_p1 }
  0x26   : > { %982 = shalt.err (!%p979_p8)
}
  0x27   : > { %s1115_s15 = smov 64   ;;  %s1116_s16 = smov 4  }
  0x28   : > { %881 = dma.hbm_to_vmem [thread:$0]  (!%p1201_p10), %s1396_s1, 1024, %s176_s28, [#allocation6], %s1115_s15, %s1115_s15, %s1116_s16  }
  0x29   : > { %s983_s7 = scalar_lea.hbm %s1398_s3, 1024 }
  0x2a   : > { %p984_p11 = scmp.ne.s32.totalorder %s1398_s3, %s983_s7  ;;  %p990_p4 = scmp.lt.u32.totalorder %s983_s7, %s1398_s3 }
  0x2c   : > { %p986_p1 = pnand %p984_p11, %p957_p12 }
  0x2e   : > { %p987_p2 = pneg %p986_p1 }
  0x30   : > { %p992_p6 = pnand %p990_p4, %p987_p2 }
  0x32   : > { %995 = shalt.err (!%p992_p6)
}
  0x33   : > { %s996_s28 = scalar_lea.vmem %s1205_s6, 1024  ;;  %p1004_p3 = scmp.lt.s32.totalorder %s1205_s6, %s1205_s6 }
  0x34   : > { %p997_p8 = scmp.ne.s32.totalorder %s1205_s6, %s996_s28  ;;  %p1005_p5 = scmp.lt.s32.totalorder %s996_s28, %s996_s28 }
  0x36   : > { %p999_p13 = pnand %p997_p8, %p957_p12  ;;  %p1006_p7 = por %p1005_p5, %p1004_p3 }
  0x38   : > { %p1000_p0 = pneg %p999_p13 }
  0x3a   : > { %p1007_p9 = pnand %p1006_p7, %p1000_p0 }
  0x3c   : > { %1010 = shalt.err (!%p1007_p9)
}
  0x3d   : > { %884 = dma.hbm_to_vmem [thread:$0]  (!%p1201_p10), %s1398_s3, 1024, %s1205_s6, [#allocation6], %s1115_s15, %s1115_s15, %s1116_s16  }
  0x3e   : > { %s1255_s14 = sadd.s32 1, %s1111_s21   ;;  %s29_s29 = sadd.s32 1, %s1107_s20 }
  0x3f   : > { %s26_s17 = ssub.s32 %s1111_s21, %s1255_s14  ;;  %p36_p12 = scmp.ne.s32.totalorder %s1107_s20, %s1103_s19 }
  0x40   : > { %p27_p11 = scmp.eq.s32.totalorder %s26_s17, 0  ;;  %p37_p1 = scmp.eq.s32.totalorder %s1111_s21, 0 }
  0x41   : > { %p1408_p2 = scmp.eq.s32.totalorder %s1174_s22, 3  ;;  %p895_p6 = scmp.lt.s32.totalorder %s1111_s21, 4 }
  0x42   : > { %s1271_s27 = scalar_select %p27_p11, %s1107_s20, %s29_s29  }
  0x43   : > { %p1265_p4 = por %p1408_p2, %p36_p12  ;;  %p38_p8 = por %p37_p1, %p36_p12 }
  0x44   : > { %s208_s30 = sand.u32 1, %s1107_s20   ;;  %s761_s6 = sshll.u32 %s1111_s21, 10 }
  0x45   : > { %s722_s7 = sshll.u32 %s208_s30, 6  ;;  %s1278_s8 = scalar_lea.hbm %s1395_s0, %s761_s6 }
  0x46   : > { %s212_s9 = scalar_lea.vmem [#allocation2], %s722_s7  ;;  %p1282_p10 = pnand %p895_p6, %p38_p8 }
  0x47   : > { %s219_s10 = sshll.u32 %s212_s9, 4  ;;  %s1286_s28 = scalar_lea.sflag [#allocation3], %s208_s30  ;;  %s1280_s10 = int_to_ptr.vmem [resolvable:$true] %s219_s10 }
  0x48   : > { %s1011_s12 = scalar_lea.hbm %s1278_s8, 1024  ;;  %p1013_p0 = pneg %p1282_p10 }
  0x49   : > { %p1012_p13 = scmp.ne.s32.totalorder %s1278_s8, %s1011_s12  ;;  %s1016_s17 = scalar_lea.hbm %s1395_s0, 4096 }
  0x4a   : > { %p1017_p7 = scmp.lt.u32.totalorder %s1278_s8, %s1395_s0  ;;  %p1018_p9 = scmp.lt.u32.totalorder %s1016_s17, %s1011_s12 }
  0x4b   : > { %p1014_p3 = pnand %p1013_p0, %p1012_p13  ;;  %p1020_p11 = scmp.lt.u32.totalorder %s1011_s12, %s1278_s8 }
  0x4c   : > { %p1019_p12 = por %p1018_p9, %p1017_p7 }
  0x4d   : > { %p1015_p5 = pneg %p1014_p3 }
  0x4e   : > { %p1021_p1 = por %p1020_p11, %p1019_p12 }
  0x50   : > { %p1022_p2 = pnand %p1021_p1, %p1015_p5 }
  0x52   : > { %1025 = shalt.err (!%p1022_p2)
}
  0x53   : > { %s1026_s30 = scalar_lea.vmem %s1280_s10, 1024  ;;  %s1117_s15 = smov [#allocation2]  }
  0x54   : > { %p1027_p6 = scmp.ne.s32.totalorder %s1280_s10, %s1026_s30  ;;  %s1031_s16 = sshll.u32 %s1117_s15, 4  ;;  %s1032_s16 = int_to_ptr.vmem [resolvable:$false] %s1031_s16 }
  0x55   : > { %s1033_s9 = scalar_lea.vmem %s1032_s16, 2048  ;;  %p1034_p3 = scmp.lt.s32.totalorder %s1280_s10, %s1032_s16 }
  0x56   : > { %p1029_p8 = pnand %p1027_p6, %p1013_p0  ;;  %p1035_p7 = scmp.lt.s32.totalorder %s1033_s9, %s1026_s30 }
  0x58   : > { %p1030_p13 = pneg %p1029_p8  ;;  %p1036_p9 = por %p1035_p7, %p1034_p3 }
  0x5a   : > { %p1037_p12 = pnand %p1036_p9, %p1030_p13 }
  0x5c   : > { %1040 = shalt.err (!%p1037_p12)
}
  0x5d   : > { %s1118_s12 = smov 128   ;;  %s1119_s13 = smov 8  }
  0x5e   : > { %888 = dma.hbm_to_vmem [thread:$0]  (!%p1282_p10), %s1278_s8, 1024, %s1280_s10, %s1286_s28, %s1118_s12, %s1118_s12, %s1119_s13  }
  0x5f   : > { %p1411_p0 = scmp.ne.s32.totalorder %s1406_s26, 0 }
  0x60   : > { %s1317_s29 = sand.u32 (!%p1411_p0), 1, %s1103_s19   ;;  %p1412_p5 = scmp.ne.s32.totalorder (!%p1411_p0), %s1404_s24, 0 }
  0x61   : > { %231 = sbr.rel (%p1411_p0) target bundleno = 605 (0x25d), region = 40  ;;  %s726_s17 = sshll.u32 (!%p1411_p0), %s1317_s29, 6 }
  0x62   : > { %s234_s7 = scalar_lea.sflag (!%p1411_p0), [#allocation3], %s1317_s29  ;;  %s1321_s6 = scalar_lea.vmem (!%p1411_p0), [#allocation2], %s726_s17 }
  0x68   : > { %1086 = dma.done.wait (%p1412_p5), %s234_s7, 1024  }
  0x69   : > { %1088 = vsyncadd (%p1412_p5), %s234_s7, 4294966272  ;;  %p1413_p10 = scmp.eq.s32.totalorder %s1174_s22, 0 }
  0x6b   : > { %1090 = dma.done.wait (%p1413_p10), [#allocation6], 2048   ;;  %p1414_p11 = pmov %p1413_p10 }
  0x6c   : > { %v939_v0 = vld [vmem:[#allocation5] sm:$0xff]   ;;  %v940_v1 = vld [vmem:[#allocation5 + $0x8] sm:$0xff]   ;;  %v941_v2 = vld [vmem:[#allocation5 + $0x10] sm:$0xff]   ;;  %s729_s11 = sshll.u32 %s1317_s29, 5  ;;  %s770_s15 = sshll.u32 %s1174_s22, 9 }
  0x6d   : > { %1092 = vsyncadd (%p1414_p11), [#allocation6], 4294965248  ;;  %818 = vmatprep.subr.bf16.mxu0 %v939_v0  ;;  %v942_v3 = vld [vmem:[#allocation5 + $0x18] sm:$0xff]   ;;  %v275_v4 = vld [vmem:[%s1321_s6] sm:$0xff]  ;;  %s271_s28 = scalar_lea.vmem [#allocation8], %s729_s11  ;;  %s1352_s12 = scalar_lea.hbm %s1400_s5, %s770_s15 }
  0x6e   : > { %819 = vmatpush3.bf16.msra.mxu0 %v939_v0  ;;  %v276_v5 = vld [vmem:[%s1321_s6 + $0x8] sm:$0xff]  ;;  %v943_v7 = vld [vmem:[#allocation5 + $0x20] sm:$0xff]   ;;  %v949_v10 = vld [vmem:[#allocation7 + $0x10] sm:$0xff]   ;;  %s625_s30 = sshll.u32 %s271_s28, 4  ;;  %s612_s22 = scalar_lea.sflag [#allocation4], %s1317_s29  ;;  %s1347_s30 = int_to_ptr.vmem [resolvable:$true] %s625_s30 }
  0x6f   : > { %820 = vmatprep.subr.bf16.mxu0 %v940_v1  ;;  %v283_v6 = vpack.c.bf16 %v276_v5, %v275_v4  ;;  %v947_v8 = vld [vmem:[#allocation7] sm:$0xff]   ;;  %v948_v9 = vld [vmem:[#allocation7 + $0x8] sm:$0xff]   ;;  %v950_v12 = vld [vmem:[#allocation7 + $0x18] sm:$0xff]   ;;  %s1041_s13 = scalar_lea.vmem %s1347_s30, 512  ;;  %s1120_s17 = smov [#allocation8]  }
  0x70   : > { %842 = vmatprep.subr.bf16.mxu1 %v947_v8  ;;  %v944_v11 = vld [vmem:[#allocation5 + $0x28] sm:$0xff]   ;;  %v945_v13 = vld [vmem:[#allocation5 + $0x30] sm:$0xff]   ;;  %v951_v14 = vld [vmem:[#allocation7 + $0x20] sm:$0xff]   ;;  %p1042_p1 = scmp.ne.s32.totalorder %s1347_s30, %s1041_s13  ;;  %s1045_s7 = sshll.u32 %s1120_s17, 4  ;;  %s1046_s7 = int_to_ptr.vmem [resolvable:$false] %s1045_s7 }
  0x71   : > { %834 = vmatprep.mubr.bf16.mxu0 %v283_v6  ;;  %843 = vmatpush3.bf16.msra.mxu1 %v947_v8  ;;  %v946_v15 = vld [vmem:[#allocation5 + $0x38] sm:$0xff]   ;;  %v277_v16 = vld [vmem:[%s1321_s6 + $0x10] sm:$0xff]  ;;  %v952_v18 = vld [vmem:[#allocation7 + $0x28] sm:$0xff]   ;;  %p1048_p8 = scmp.lt.s32.totalorder %s1347_s30, %s1046_s7 }
  0x72   : > { %821 = vmatpush3.bf16.msra.mxu0 %v940_v1  ;;  %844 = vmatprep.subr.bf16.mxu1 %v948_v9  ;;  %v278_v17 = vld [vmem:[%s1321_s6 + $0x18] sm:$0xff]  ;;  %v279_v19 = vld [vmem:[%s1321_s6 + $0x20] sm:$0xff]  ;;  %v280_v20 = vld [vmem:[%s1321_s6 + $0x28] sm:$0xff]  ;;  %p1043_p2 = pnand %p1042_p1, %p1265_p4 }
  0x73   : > { %822 = vmatprep.subr.bf16.mxu0 %v941_v2  ;;  %v284_v21 = vpack.c.bf16 %v278_v17, %v277_v16  ;;  %v285_v22 = vpack.c.bf16 %v280_v20, %v279_v19  ;;  %v281_v23 = vld [vmem:[%s1321_s6 + $0x30] sm:$0xff]  ;;  %v282_v24 = vld [vmem:[%s1321_s6 + $0x38] sm:$0xff]  ;;  %v730_v28 = vld [vmem:[%s1397_s2] ss:$0 sm:$0xff]  ;;  %s1047_s6 = scalar_lea.vmem %s1046_s7, 1024 }
  0x74   : > { %v286_v25 = vpack.c.bf16 %v282_v24, %v281_v23  ;;  %v953_v26 = vld [vmem:[#allocation7 + $0x30] sm:$0xff]   ;;  %v954_v27 = vld [vmem:[#allocation7 + $0x38] sm:$0xff]   ;;  %v739_v58 = vld [vmem:[%s1399_s4] ss:$0 sm:$0xff]  ;;  %p1044_p6 = pneg %p1043_p2  ;;  %p1049_p13 = scmp.lt.s32.totalorder %s1047_s6, %s1041_s13 }
  0x75   : > { %845 = vmatpush3.bf16.msra.mxu1 %v948_v9 }
  0x76   : > { %823 = vmatpush3.bf16.msra.mxu0 %v941_v2  ;;  %846 = vmatprep.subr.bf16.mxu1 %v949_v10  ;;  %p1050_p3 = por %p1049_p13, %p1048_p8 }
  0x77   : > { %824 = vmatprep.subr.bf16.mxu0 %v942_v3 }
  0x78   : > { %p1051_p7 = pnand %p1050_p3, %p1044_p6 }
  0x79   : > { %847 = vmatpush3.bf16.msra.mxu1 %v949_v10 }
  0x7a   : > { %825 = vmatpush3.bf16.msra.mxu0 %v942_v3  ;;  %848 = vmatprep.subr.bf16.mxu1 %v950_v12 }
  0x7b   : > { %826 = vmatprep.subr.bf16.mxu0 %v943_v7 }
  0x7d   : > { %849 = vmatpush3.bf16.msra.mxu1 %v950_v12 }
  0x7e   : > { %827 = vmatpush3.bf16.msra.mxu0 %v943_v7  ;;  %850 = vmatprep.subr.bf16.mxu1 %v951_v14 }
  0x7f   : > { %828 = vmatprep.subr.bf16.mxu0 %v944_v11 }
  0x81   : > { %851 = vmatpush3.bf16.msra.mxu1 %v951_v14 }
  0x82   : > { %829 = vmatpush3.bf16.msra.mxu0 %v944_v11  ;;  %852 = vmatprep.subr.bf16.mxu1 %v952_v18 }
  0x83   : > { %830 = vmatprep.subr.bf16.mxu0 %v945_v13 }
  0x85   : > { %853 = vmatpush3.bf16.msra.mxu1 %v952_v18 }
  0x86   : > { %831 = vmatpush3.bf16.msra.mxu0 %v945_v13  ;;  %854 = vmatprep.subr.bf16.mxu1 %v953_v26 }
  0x87   : > { %832 = vmatprep.subr.bf16.mxu0 %v946_v15 }
  0x89   : > { %855 = vmatpush3.bf16.msra.mxu1 %v953_v26 }
  0x8a   : > { %833 = vmatpush3.bf16.msra.mxu0 %v946_v15  ;;  %856 = vmatprep.subr.bf16.mxu1 %v954_v27 }
  0x8d   : > { %835 = vmatmul.mubr.bf16.vlgmr.msra.gmra.mrb[0].mxu0 %v284_v21  ;;  %857 = vmatpush3.bf16.msra.mxu1 %v954_v27 }
  0x8e   : > { %838 = vmatprep.mubr.bf16.mxu0 %v285_v22 }
  0x95   : > { %839 = vmatmul.mubr.bf16.gmra.mrb[4].mxu0 %v286_v25 }
 0x160   : > { %v836_v29 = vpop.f32.mrb[0].mxu0 }
 0x161   : > { %v401_v30 = vadd.f32 %v836_v29, %v730_v28  ;;  %v392_v31 = vpop.f32.mrb[1].mxu0 }
 0x162   : > { %v393_v32 = vadd.f32 %v730_v28, %v392_v31  ;;  %v837_v33 = vpop.f32.mrb[2].mxu0 }
 0x163   : > { %v404_v34 = vadd.f32 %v837_v33, %v730_v28  ;;  %v395_v35 = vpop.f32.mrb[3].mxu0  ;;  %v425_v37 = vmax.f32 %v401_v30, 0.0 }
 0x164   : > { %v396_v36 = vadd.f32 %v730_v28, %v395_v35  ;;  %v423_v39 = vmax.f32 %v393_v32, 0.0 }
 0x165   : > { %v426_v38 = vmax.f32 %v404_v34, 0.0 }
 0x166   : > { %v424_v40 = vmax.f32 %v396_v36, 0.0 }
 0x167   : > { %v432_v41 = vpack.c.bf16 %v426_v38, %v425_v37 }
 0x168   : > { %v840_v42 = vpop.f32.mrb[4].mxu0  ;;  %v431_v43 = vpack.c.bf16 %v424_v40, %v423_v39 }
 0x169   : > { %v417_v44 = vadd.f32 %v840_v42, %v730_v28  ;;  %v408_v45 = vpop.f32.mrb[5].mxu0 }
 0x16a   : > { %v409_v46 = vadd.f32 %v730_v28, %v408_v45  ;;  %v841_v47 = vpop.f32.mrb[6].mxu0  ;;  %858 = vmatprep.mubr.bf16.mxu1 %v431_v43 }
 0x16b   : > { %v420_v48 = vadd.f32 %v841_v47, %v730_v28  ;;  %v411_v49 = vpop.f32.mrb[7].mxu0  ;;  %859 = vmatmul.mubr.bf16.vlgmr.msra.gmra.mrb[0].mxu1 %v432_v41  ;;  %v429_v51 = vmax.f32 %v417_v44, 0.0 }
 0x16c   : > { %v412_v50 = vadd.f32 %v730_v28, %v411_v49  ;;  %v427_v53 = vmax.f32 %v409_v46, 0.0 }
 0x16d   : > { %v430_v52 = vmax.f32 %v420_v48, 0.0 }
 0x16e   : > { %v428_v54 = vmax.f32 %v412_v50, 0.0 }
 0x16f   : > { %v434_v55 = vpack.c.bf16 %v430_v52, %v429_v51 }
 0x170   : > { %v433_v56 = vpack.c.bf16 %v428_v54, %v427_v53 }
 0x172   : > { %862 = vmatprep.mubr.bf16.mxu1 %v433_v56 }
 0x173   : > { %863 = vmatmul.mubr.bf16.gmra.mrb[4].mxu1 %v434_v55 }
 0x23e   : > { %v860_v57 = vpop.f32.mrb[0].mxu1 }
 0x23f   : > { %v540_v59 = vpop.f32.mrb[1].mxu1  ;;  %v549_v61 = vadd.f32 %v860_v57, %v739_v58 }
 0x240   : > { %v861_v60 = vpop.f32.mrb[2].mxu1  ;;  %v541_v0 = vadd.f32 %v739_v58, %v540_v59 }
 0x241   : > { %v552_v62 = vadd.f32 %v861_v60, %v739_v58  ;;  %v543_v63 = vpop.f32.mrb[3].mxu1 }
 0x242   : > { %v544_v1 = vadd.f32 %v739_v58, %v543_v63 }
 0x243   : > { %v779_v2 = vpack.c.bf16 %v552_v62, %v549_v61 }
 0x244   : > { %v774_v3 = vpack.c.bf16 %v544_v1, %v541_v0 }
 0x245   : > { %791 = vst [vmem:[%s271_s28 + $0x8] sm:$0xff] %v779_v2  }
 0x246   : > { %775 = vst [vmem:[%s271_s28] sm:$0xff] %v774_v3   ;;  %v864_v4 = vpop.f32.mrb[4].mxu1 }
 0x247   : > { %v556_v5 = vpop.f32.mrb[5].mxu1  ;;  %v565_v7 = vadd.f32 %v864_v4, %v739_v58 }
 0x248   : > { %v865_v6 = vpop.f32.mrb[6].mxu1  ;;  %v557_v10 = vadd.f32 %v739_v58, %v556_v5 }
 0x249   : > { %v568_v8 = vadd.f32 %v865_v6, %v739_v58  ;;  %v559_v9 = vpop.f32.mrb[7].mxu1 }
 0x24a   : > { %v560_v11 = vadd.f32 %v739_v58, %v559_v9 }
 0x24b   : > { %v789_v12 = vpack.c.bf16 %v568_v8, %v565_v7 }
 0x24c   : > { %v784_v13 = vpack.c.bf16 %v560_v11, %v557_v10 }
 0x24d   : > { %793 = vst [vmem:[%s271_s28 + $0x18] sm:$0xff] %v789_v12  }
 0x24e   : > { %792 = vst [vmem:[%s271_s28 + $0x10] sm:$0xff] %v784_v13  }
 0x24f   : > { %1054 = shalt.err (!%p1051_p7)
}
 0x250   : > { %s1055_s24 = scalar_lea.hbm %s1352_s12, 512  ;;  %s1059_s10 = scalar_lea.hbm %s1400_s5, 2048 }
 0x251   : > { %p1056_p9 = scmp.ne.s32.totalorder %s1352_s12, %s1055_s24  ;;  %p1060_p5 = scmp.lt.u32.totalorder %s1352_s12, %s1400_s5 }
 0x252   : > { %p1061_p10 = scmp.lt.u32.totalorder %s1059_s10, %s1055_s24  ;;  %p1063_p1 = scmp.lt.u32.totalorder %s1055_s24, %s1352_s12 }
 0x253   : > { %p1057_p12 = pnand %p1056_p9, %p1265_p4 }
 0x254   : > { %p1062_p11 = por %p1061_p10, %p1060_p5 }
 0x255   : > { %p1058_p0 = pneg %p1057_p12 }
 0x256   : > { %p1064_p2 = por %p1063_p1, %p1062_p11 }
 0x258   : > { %p1065_p6 = pnand %p1064_p2, %p1058_p0 }
 0x25a   : > { %1068 = shalt.err (!%p1065_p6)
}
 0x25b   : > { %s1121_s15 = smov 64   ;;  %s1122_s16 = smov 4  }
 0x25c   : > { %876 = dma.vmem_to_hbm [thread:$0]  (%p1265_p4), %s1347_s30, 512, %s1352_s12, %s612_s22, %s1121_s15, %s1121_s15, %s1122_s16  }
 0x25d PF: > { %p898_p8 = scmp.ge.s32.totalorder %s1111_s21, 2  ;;  %s640_s9 = sand.u32 1, %s1099_s18  }
 0x25e   : > { %p1415_p13 = scmp.ne.s32.totalorder %s1405_s25, 0  ;;  %s641_s13 = scalar_lea.sflag [#allocation4], %s640_s9 }
 0x260   : > { %p890_p3 = pnand %p898_p8, %p1415_p13 }
 0x262   : > { %1094 = dma.done.wait (!%p890_p3), %s641_s13, 512  }
 0x263   : > { %1096 = vsyncadd (!%p890_p3), %s641_s13, 4294966784  ;;  %p19_p7 = scmp.ge.s32.totalorder %s1255_s14, 6   ;;  %s1416_s18 = smov %s1103_s19 }
 0x264   : > { %s1417_s19 = smov %s1107_s20  ;;  %s1418_s20 = smov %s1271_s27 }
 0x265   : > { %s1419_s21 = smov %s1255_s14  ;;  %21 = sbr.rel (!%p19_p7) target bundleno = 6 (0x6), region = 93 }
 0x26c   :  { %646 = vsyncpa [#allocation3], 1 }
 0x26d   :  { %648 = vsyncpa [#allocation3 + $0x1], 1 }
 0x26e   :  { %649 = vsyncpa [#allocation6], 1 }
 0x26f   :  { %650 = vsyncpa [#allocation4], 1 }
 0x270   :  { %652 = vsyncpa [#allocation4 + $0x1], 1 }

</bundles_post_ra>
